<compile_context>
chip_gen: v7x
topology: tpu7x:2x2x1
jax: 0.10.0
libtpu: 0.0.40
codegen_flags: <defaults>
</compile_context>

<pallas_src>
import jax
import jax.numpy as jnp
from jax.experimental import pallas as pl
from jax.experimental.pallas import tpu as pltpu


def make_dqsn_kernel(T: int, B: int, H: int, O: int, Vth: float, tau: float):
    inv_tau = 1.0 / tau
    decay = 1.0 - inv_tau

    def dqsn_kernel(x_ref, w0_ref, b0_ref, w1_ref, b1_ref, w2_ref, b2_ref,
                    vout_ref, s0_scr, h1_scr, s1_scr, o_scr):
        x = x_ref[...]                              # (B, I)  f32
        w0 = w0_ref[...]                            # (I, H)  f32
        w1 = w1_ref[...]                            # (H, H)  bf16 (cast in wrapper)
        w2 = w2_ref[...]                            # (H, O)  bf16 (cast in wrapper)

        # ---- Phase 0: loop-invariant layer-0 pre-activation (runs once, f32) ----
        h0_pre = jnp.dot(x, w0, preferred_element_type=jnp.float32) + b0_ref[...]

        # ---- Phase 1: IF0 recurrence (pure VPU), stack spikes over all T ----
        v0 = jnp.zeros((B, H), jnp.float32)
        for t in range(T):                          # static Python unroll
            v0 = v0 + h0_pre
            fire0 = v0 >= Vth
            s0_scr[pl.ds(t * B, B), :] = fire0.astype(jnp.float32)   # exact 0/1
            v0 = jnp.where(fire0, 0.0, v0)          # fused hard reset

        # ---- Phase 2: ONE batched hidden matmul over all T timesteps ----
        h1_scr[...] = (jnp.dot(s0_scr[...].astype(jnp.bfloat16), w1,
                               preferred_element_type=jnp.float32)
                       + b1_ref[...])               # (T*B, H) f32

        # ---- Phase 3: IF1 recurrence (pure VPU) over precomputed h1_t rows ----
        v1 = jnp.zeros((B, H), jnp.float32)
        for t in range(T):
            v1 = v1 + h1_scr[pl.ds(t * B, B), :]
            fire1 = v1 >= Vth
            s1_scr[pl.ds(t * B, B), :] = fire1.astype(jnp.float32)
            v1 = jnp.where(fire1, 0.0, v1)

        # ---- Phase 4: ONE batched output matmul over all T timesteps ----
        o_scr[...] = (jnp.dot(s1_scr[...].astype(jnp.bfloat16), w2,
                              preferred_element_type=jnp.float32)
                      + b2_ref[...])                # (T*B, O) f32

        # ---- Phase 5: NonSpikingLIF fold (tiny unrolled VPU scan) ----
        vlif = jnp.zeros((B, O), jnp.float32)
        for t in range(T):
            vlif = vlif * decay + o_scr[pl.ds(t * B, B), :] * inv_tau
        vout_ref[...] = vlif

    return dqsn_kernel


def dqsn_forward(x, params, *, T=16, Vth=1.0, tau=2.0):
    """x: (B, input_size) f32. params: weights (in, out) and biases (1, out)."""
    B = x.shape[0]
    H = params["w0"].shape[1]
    O = params["w2"].shape[1]
    vmem = pl.BlockSpec(memory_space=pltpu.MemorySpace.VMEM)
    kernel = make_dqsn_kernel(T, B, H, O, Vth, tau)
    # Cast the batched-matmul weights to bf16 in the wrapper: halves their DMA
    # bytes and avoids holding f32 + bf16 copies live in VMEM.
    w1 = params["w1"].astype(jnp.bfloat16)
    w2 = params["w2"].astype(jnp.bfloat16)
    return pl.pallas_call(
        kernel,
        out_shape=jax.ShapeDtypeStruct((B, O), jnp.float32),
        in_specs=[vmem] * 7,
        out_specs=vmem,
        scratch_shapes=[
            pltpu.VMEM((T * B, H), jnp.float32),   # stacked IF0 spikes
            pltpu.VMEM((T * B, H), jnp.float32),   # stacked hidden pre-activations
            pltpu.VMEM((T * B, H), jnp.float32),   # stacked IF1 spikes
            pltpu.VMEM((T * B, O), jnp.float32),   # stacked output charges
        ],
    )(x, params["w0"], params["b0"], w1, params["b1"], w2, params["b2"])


def init_params(key, input_size, hidden_size, output_size):
    """Deterministic synthetic parameters (PyTorch-Linear-like uniform init)."""
    ks = jax.random.split(key, 6)

    def lin(kw, kb, fan_in, fan_out):
        bound = 1.0 / jnp.sqrt(fan_in)
        w = jax.random.uniform(kw, (fan_in, fan_out), jnp.float32, -bound, bound)
        b = jax.random.uniform(kb, (1, fan_out), jnp.float32, -bound, bound)
        return w, b

    w0, b0 = lin(ks[0], ks[1], input_size, hidden_size)
    w1, b1 = lin(ks[2], ks[3], hidden_size, hidden_size)
    w2, b2 = lin(ks[4], ks[5], hidden_size, output_size)
    return dict(w0=w0, b0=b0, w1=w1, b1=b1, w2=w2, b2=b2)


def dqsn_reference(x, params, *, T=16, Vth=1.0, tau=2.0):
    """Pure-JAX per-timestep reference (mirrors the PyTorch loop structure).

    Uses the same bf16 cast on w1/w2 as the kernel (spikes are exact 0/1 in
    bf16, so only the shared weight rounding affects numerics).
    """
    B = x.shape[0]
    H = params["w0"].shape[1]
    O = params["w2"].shape[1]
    inv_tau = 1.0 / tau
    decay = 1.0 - inv_tau
    w1 = params["w1"].astype(jnp.bfloat16)
    w2 = params["w2"].astype(jnp.bfloat16)
    h0_pre = jnp.dot(x, params["w0"], preferred_element_type=jnp.float32) + params["b0"]
    v0 = jnp.zeros((B, H), jnp.float32)
    v1 = jnp.zeros((B, H), jnp.float32)
    vlif = jnp.zeros((B, O), jnp.float32)
    for _ in range(T):
        v0 = v0 + h0_pre
        fire0 = v0 >= Vth
        s0 = fire0.astype(jnp.bfloat16)
        v0 = jnp.where(fire0, 0.0, v0)
        v1 = v1 + jnp.dot(s0, w1, preferred_element_type=jnp.float32) + params["b1"]
        fire1 = v1 >= Vth
        s1 = fire1.astype(jnp.bfloat16)
        v1 = jnp.where(fire1, 0.0, v1)
        o = jnp.dot(s1, w2, preferred_element_type=jnp.float32) + params["b2"]
        vlif = vlif * decay + o * inv_tau
    return vlif


if __name__ == "__main__":
    # Small shapes consistent with the module: a flat-feature DQN-style input.
    batch, input_size, hidden_size, output_size = 2, 16, 32, 4
    T, Vth, tau = 16, 1.0, 2.0

    key = jax.random.PRNGKey(0)
    k_x, k_p = jax.random.split(key)
    x = jax.random.normal(k_x, (batch, input_size), jnp.float32)
    params = init_params(k_p, input_size, hidden_size, output_size)

    fwd = jax.jit(lambda xx, pp: dqsn_forward(xx, pp, T=T, Vth=Vth, tau=tau))
    out = jax.block_until_ready(fwd(x, params))

    ref = dqsn_reference(x, params, T=T, Vth=Vth, tau=tau)
    assert out.shape == (batch, output_size)
    assert jnp.allclose(out, ref, atol=1e-4, rtol=1e-4), (out, ref)

    print("KERNEL_OK")
</pallas_src>

<mosaic_0001>
module attributes {stable_mosaic.version = 11 : i64} {
  func.func @dqsn_kernel(%arg0: memref<2x16xf32, #tpu.memory_space<vmem>>, %arg1: memref<16x32xf32, #tpu.memory_space<vmem>>, %arg2: memref<1x32xf32, #tpu.memory_space<vmem>>, %arg3: memref<32x32xbf16, #tpu.memory_space<vmem>>, %arg4: memref<1x32xf32, #tpu.memory_space<vmem>>, %arg5: memref<32x4xbf16, #tpu.memory_space<vmem>>, %arg6: memref<1x4xf32, #tpu.memory_space<vmem>>, %arg7: memref<2x4xf32, #tpu.memory_space<vmem>>, %arg8: memref<32x32xf32, #tpu.memory_space<vmem>>, %arg9: memref<32x32xf32, #tpu.memory_space<vmem>>, %arg10: memref<32x32xf32, #tpu.memory_space<vmem>>, %arg11: memref<32x4xf32, #tpu.memory_space<vmem>>) attributes {dimension_semantics = [], scalar_prefetch = 0 : i64, scratch_operands = 4 : i64, tpu.core_type = #tpu.core_type<tc>} {
    %c0 = arith.constant 0 : index
    %c0_0 = arith.constant 0 : index
    %0 = vector.load %arg0[%c0, %c0_0] : memref<2x16xf32, #tpu.memory_space<vmem>>, vector<2x16xf32>
    %c0_1 = arith.constant 0 : index
    %c0_2 = arith.constant 0 : index
    %1 = vector.load %arg1[%c0_1, %c0_2] : memref<16x32xf32, #tpu.memory_space<vmem>>, vector<16x32xf32>
    %c0_3 = arith.constant 0 : index
    %c0_4 = arith.constant 0 : index
    %2 = vector.load %arg3[%c0_3, %c0_4] : memref<32x32xbf16, #tpu.memory_space<vmem>>, vector<32x32xbf16>
    %c0_5 = arith.constant 0 : index
    %c0_6 = arith.constant 0 : index
    %3 = vector.load %arg5[%c0_5, %c0_6] : memref<32x4xbf16, #tpu.memory_space<vmem>>, vector<32x4xbf16>
    %cst = arith.constant dense<0.000000e+00> : vector<2x32xf32>
    %4 = tpu.matmul %0, %1, %cst {dimension_numbers = #tpu.dot_dimension_numbers<[1], [0], [0], [1], [0, 0, 1, 1], [], []>} : vector<2x16xf32>, vector<16x32xf32>, vector<2x32xf32> -> vector<2x32xf32>
    %c0_7 = arith.constant 0 : index
    %c0_8 = arith.constant 0 : index
    %5 = vector.load %arg2[%c0_7, %c0_8] : memref<1x32xf32, #tpu.memory_space<vmem>>, vector<1x32xf32>
    %6 = vector.broadcast %5 : vector<1x32xf32> to vector<2x32xf32>
    %7 = arith.addf %4, %6 : vector<2x32xf32>
    %cst_9 = arith.constant 0.000000e+00 : f32
    %8 = vector.broadcast %cst_9 : f32 to vector<2x32xf32>
    %9 = arith.addf %8, %7 : vector<2x32xf32>
    %cst_10 = arith.constant 1.000000e+00 : f32
    %10 = vector.broadcast %cst_10 : f32 to vector<2x32xf32>
    %11 = arith.cmpf oge, %9, %10 : vector<2x32xf32>
    %12 = arith.extui %11 : vector<2x32xi1> to vector<2x32xi32>
    %13 = arith.sitofp %12 : vector<2x32xi32> to vector<2x32xf32>
    %c0_11 = arith.constant 0 : index
    %c0_12 = arith.constant 0 : index
    %14 = vector.load %arg8[%c0_11, %c0_12] : memref<32x32xf32, #tpu.memory_space<vmem>>, vector<2x32xf32>
    tpu.vector_store %arg8[%c0_11, %c0_12], %13 {strides = array<i32>} : memref<32x32xf32, #tpu.memory_space<vmem>>, vector<2x32xf32>,
    %cst_13 = arith.constant 0.000000e+00 : f32
    %15 = vector.broadcast %cst_13 : f32 to vector<2x32xf32>
    %16 = arith.select %11, %15, %9 : vector<2x32xi1>, vector<2x32xf32>
    %17 = arith.addf %16, %7 : vector<2x32xf32>
    %cst_14 = arith.constant 1.000000e+00 : f32
    %18 = vector.broadcast %cst_14 : f32 to vector<2x32xf32>
    %19 = arith.cmpf oge, %17, %18 : vector<2x32xf32>
    %20 = arith.extui %19 : vector<2x32xi1> to vector<2x32xi32>
    %21 = arith.sitofp %20 : vector<2x32xi32> to vector<2x32xf32>
    %c2 = arith.constant 2 : index
    %c0_15 = arith.constant 0 : index
    %22 = vector.load %arg8[%c2, %c0_15] : memref<32x32xf32, #tpu.memory_space<vmem>>, vector<2x32xf32>
    tpu.vector_store %arg8[%c2, %c0_15], %21 {strides = array<i32>} : memref<32x32xf32, #tpu.memory_space<vmem>>, vector<2x32xf32>,
    %cst_16 = arith.constant 0.000000e+00 : f32
    %23 = vector.broadcast %cst_16 : f32 to vector<2x32xf32>
    %24 = arith.select %19, %23, %17 : vector<2x32xi1>, vector<2x32xf32>
    %25 = arith.addf %24, %7 : vector<2x32xf32>
    %cst_17 = arith.constant 1.000000e+00 : f32
    %26 = vector.broadcast %cst_17 : f32 to vector<2x32xf32>
    %27 = arith.cmpf oge, %25, %26 : vector<2x32xf32>
    %28 = arith.extui %27 : vector<2x32xi1> to vector<2x32xi32>
    %29 = arith.sitofp %28 : vector<2x32xi32> to vector<2x32xf32>
    %c4 = arith.constant 4 : index
    %c0_18 = arith.constant 0 : index
    %30 = vector.load %arg8[%c4, %c0_18] : memref<32x32xf32, #tpu.memory_space<vmem>>, vector<2x32xf32>
    tpu.vector_store %arg8[%c4, %c0_18], %29 {strides = array<i32>} : memref<32x32xf32, #tpu.memory_space<vmem>>, vector<2x32xf32>,
    %cst_19 = arith.constant 0.000000e+00 : f32
    %31 = vector.broadcast %cst_19 : f32 to vector<2x32xf32>
    %32 = arith.select %27, %31, %25 : vector<2x32xi1>, vector<2x32xf32>
    %33 = arith.addf %32, %7 : vector<2x32xf32>
    %cst_20 = arith.constant 1.000000e+00 : f32
    %34 = vector.broadcast %cst_20 : f32 to vector<2x32xf32>
    %35 = arith.cmpf oge, %33, %34 : vector<2x32xf32>
    %36 = arith.extui %35 : vector<2x32xi1> to vector<2x32xi32>
    %37 = arith.sitofp %36 : vector<2x32xi32> to vector<2x32xf32>
    %c6 = arith.constant 6 : index
    %c0_21 = arith.constant 0 : index
    %38 = vector.load %arg8[%c6, %c0_21] : memref<32x32xf32, #tpu.memory_space<vmem>>, vector<2x32xf32>
    tpu.vector_store %arg8[%c6, %c0_21], %37 {strides = array<i32>} : memref<32x32xf32, #tpu.memory_space<vmem>>, vector<2x32xf32>,
    %cst_22 = arith.constant 0.000000e+00 : f32
    %39 = vector.broadcast %cst_22 : f32 to vector<2x32xf32>
    %40 = arith.select %35, %39, %33 : vector<2x32xi1>, vector<2x32xf32>
    %41 = arith.addf %40, %7 : vector<2x32xf32>
    %cst_23 = arith.constant 1.000000e+00 : f32
    %42 = vector.broadcast %cst_23 : f32 to vector<2x32xf32>
    %43 = arith.cmpf oge, %41, %42 : vector<2x32xf32>
    %44 = arith.extui %43 : vector<2x32xi1> to vector<2x32xi32>
    %45 = arith.sitofp %44 : vector<2x32xi32> to vector<2x32xf32>
    %c8 = arith.constant 8 : index
    %c0_24 = arith.constant 0 : index
    %46 = vector.load %arg8[%c8, %c0_24] : memref<32x32xf32, #tpu.memory_space<vmem>>, vector<2x32xf32>
    tpu.vector_store %arg8[%c8, %c0_24], %45 {strides = array<i32>} : memref<32x32xf32, #tpu.memory_space<vmem>>, vector<2x32xf32>,
    %cst_25 = arith.constant 0.000000e+00 : f32
    %47 = vector.broadcast %cst_25 : f32 to vector<2x32xf32>
    %48 = arith.select %43, %47, %41 : vector<2x32xi1>, vector<2x32xf32>
    %49 = arith.addf %48, %7 : vector<2x32xf32>
    %cst_26 = arith.constant 1.000000e+00 : f32
    %50 = vector.broadcast %cst_26 : f32 to vector<2x32xf32>
    %51 = arith.cmpf oge, %49, %50 : vector<2x32xf32>
    %52 = arith.extui %51 : vector<2x32xi1> to vector<2x32xi32>
    %53 = arith.sitofp %52 : vector<2x32xi32> to vector<2x32xf32>
    %c10 = arith.constant 10 : index
    %c0_27 = arith.constant 0 : index
    %54 = vector.load %arg8[%c10, %c0_27] : memref<32x32xf32, #tpu.memory_space<vmem>>, vector<2x32xf32>
    tpu.vector_store %arg8[%c10, %c0_27], %53 {strides = array<i32>} : memref<32x32xf32, #tpu.memory_space<vmem>>, vector<2x32xf32>,
    %cst_28 = arith.constant 0.000000e+00 : f32
    %55 = vector.broadcast %cst_28 : f32 to vector<2x32xf32>
    %56 = arith.select %51, %55, %49 : vector<2x32xi1>, vector<2x32xf32>
    %57 = arith.addf %56, %7 : vector<2x32xf32>
    %cst_29 = arith.constant 1.000000e+00 : f32
    %58 = vector.broadcast %cst_29 : f32 to vector<2x32xf32>
    %59 = arith.cmpf oge, %57, %58 : vector<2x32xf32>
    %60 = arith.extui %59 : vector<2x32xi1> to vector<2x32xi32>
    %61 = arith.sitofp %60 : vector<2x32xi32> to vector<2x32xf32>
    %c12 = arith.constant 12 : index
    %c0_30 = arith.constant 0 : index
    %62 = vector.load %arg8[%c12, %c0_30] : memref<32x32xf32, #tpu.memory_space<vmem>>, vector<2x32xf32>
    tpu.vector_store %arg8[%c12, %c0_30], %61 {strides = array<i32>} : memref<32x32xf32, #tpu.memory_space<vmem>>, vector<2x32xf32>,
    %cst_31 = arith.constant 0.000000e+00 : f32
    %63 = vector.broadcast %cst_31 : f32 to vector<2x32xf32>
    %64 = arith.select %59, %63, %57 : vector<2x32xi1>, vector<2x32xf32>
    %65 = arith.addf %64, %7 : vector<2x32xf32>
    %cst_32 = arith.constant 1.000000e+00 : f32
    %66 = vector.broadcast %cst_32 : f32 to vector<2x32xf32>
    %67 = arith.cmpf oge, %65, %66 : vector<2x32xf32>
    %68 = arith.extui %67 : vector<2x32xi1> to vector<2x32xi32>
    %69 = arith.sitofp %68 : vector<2x32xi32> to vector<2x32xf32>
    %c14 = arith.constant 14 : index
    %c0_33 = arith.constant 0 : index
    %70 = vector.load %arg8[%c14, %c0_33] : memref<32x32xf32, #tpu.memory_space<vmem>>, vector<2x32xf32>
    tpu.vector_store %arg8[%c14, %c0_33], %69 {strides = array<i32>} : memref<32x32xf32, #tpu.memory_space<vmem>>, vector<2x32xf32>,
    %cst_34 = arith.constant 0.000000e+00 : f32
    %71 = vector.broadcast %cst_34 : f32 to vector<2x32xf32>
    %72 = arith.select %67, %71, %65 : vector<2x32xi1>, vector<2x32xf32>
    %73 = arith.addf %72, %7 : vector<2x32xf32>
    %cst_35 = arith.constant 1.000000e+00 : f32
    %74 = vector.broadcast %cst_35 : f32 to vector<2x32xf32>
    %75 = arith.cmpf oge, %73, %74 : vector<2x32xf32>
    %76 = arith.extui %75 : vector<2x32xi1> to vector<2x32xi32>
    %77 = arith.sitofp %76 : vector<2x32xi32> to vector<2x32xf32>
    %c16 = arith.constant 16 : index
    %c0_36 = arith.constant 0 : index
    %78 = vector.load %arg8[%c16, %c0_36] : memref<32x32xf32, #tpu.memory_space<vmem>>, vector<2x32xf32>
    tpu.vector_store %arg8[%c16, %c0_36], %77 {strides = array<i32>} : memref<32x32xf32, #tpu.memory_space<vmem>>, vector<2x32xf32>,
    %cst_37 = arith.constant 0.000000e+00 : f32
    %79 = vector.broadcast %cst_37 : f32 to vector<2x32xf32>
    %80 = arith.select %75, %79, %73 : vector<2x32xi1>, vector<2x32xf32>
    %81 = arith.addf %80, %7 : vector<2x32xf32>
    %cst_38 = arith.constant 1.000000e+00 : f32
    %82 = vector.broadcast %cst_38 : f32 to vector<2x32xf32>
    %83 = arith.cmpf oge, %81, %82 : vector<2x32xf32>
    %84 = arith.extui %83 : vector<2x32xi1> to vector<2x32xi32>
    %85 = arith.sitofp %84 : vector<2x32xi32> to vector<2x32xf32>
    %c18 = arith.constant 18 : index
    %c0_39 = arith.constant 0 : index
    %86 = vector.load %arg8[%c18, %c0_39] : memref<32x32xf32, #tpu.memory_space<vmem>>, vector<2x32xf32>
    tpu.vector_store %arg8[%c18, %c0_39], %85 {strides = array<i32>} : memref<32x32xf32, #tpu.memory_space<vmem>>, vector<2x32xf32>,
    %cst_40 = arith.constant 0.000000e+00 : f32
    %87 = vector.broadcast %cst_40 : f32 to vector<2x32xf32>
    %88 = arith.select %83, %87, %81 : vector<2x32xi1>, vector<2x32xf32>
    %89 = arith.addf %88, %7 : vector<2x32xf32>
    %cst_41 = arith.constant 1.000000e+00 : f32
    %90 = vector.broadcast %cst_41 : f32 to vector<2x32xf32>
    %91 = arith.cmpf oge, %89, %90 : vector<2x32xf32>
    %92 = arith.extui %91 : vector<2x32xi1> to vector<2x32xi32>
    %93 = arith.sitofp %92 : vector<2x32xi32> to vector<2x32xf32>
    %c20 = arith.constant 20 : index
    %c0_42 = arith.constant 0 : index
    %94 = vector.load %arg8[%c20, %c0_42] : memref<32x32xf32, #tpu.memory_space<vmem>>, vector<2x32xf32>
    tpu.vector_store %arg8[%c20, %c0_42], %93 {strides = array<i32>} : memref<32x32xf32, #tpu.memory_space<vmem>>, vector<2x32xf32>,
    %cst_43 = arith.constant 0.000000e+00 : f32
    %95 = vector.broadcast %cst_43 : f32 to vector<2x32xf32>
    %96 = arith.select %91, %95, %89 : vector<2x32xi1>, vector<2x32xf32>
    %97 = arith.addf %96, %7 : vector<2x32xf32>
    %cst_44 = arith.constant 1.000000e+00 : f32
    %98 = vector.broadcast %cst_44 : f32 to vector<2x32xf32>
    %99 = arith.cmpf oge, %97, %98 : vector<2x32xf32>
    %100 = arith.extui %99 : vector<2x32xi1> to vector<2x32xi32>
    %101 = arith.sitofp %100 : vector<2x32xi32> to vector<2x32xf32>
    %c22 = arith.constant 22 : index
    %c0_45 = arith.constant 0 : index
    %102 = vector.load %arg8[%c22, %c0_45] : memref<32x32xf32, #tpu.memory_space<vmem>>, vector<2x32xf32>
    tpu.vector_store %arg8[%c22, %c0_45], %101 {strides = array<i32>} : memref<32x32xf32, #tpu.memory_space<vmem>>, vector<2x32xf32>,
    %cst_46 = arith.constant 0.000000e+00 : f32
    %103 = vector.broadcast %cst_46 : f32 to vector<2x32xf32>
    %104 = arith.select %99, %103, %97 : vector<2x32xi1>, vector<2x32xf32>
    %105 = arith.addf %104, %7 : vector<2x32xf32>
    %cst_47 = arith.constant 1.000000e+00 : f32
    %106 = vector.broadcast %cst_47 : f32 to vector<2x32xf32>
    %107 = arith.cmpf oge, %105, %106 : vector<2x32xf32>
    %108 = arith.extui %107 : vector<2x32xi1> to vector<2x32xi32>
    %109 = arith.sitofp %108 : vector<2x32xi32> to vector<2x32xf32>
    %c24 = arith.constant 24 : index
    %c0_48 = arith.constant 0 : index
    %110 = vector.load %arg8[%c24, %c0_48] : memref<32x32xf32, #tpu.memory_space<vmem>>, vector<2x32xf32>
    tpu.vector_store %arg8[%c24, %c0_48], %109 {strides = array<i32>} : memref<32x32xf32, #tpu.memory_space<vmem>>, vector<2x32xf32>,
    %cst_49 = arith.constant 0.000000e+00 : f32
    %111 = vector.broadcast %cst_49 : f32 to vector<2x32xf32>
    %112 = arith.select %107, %111, %105 : vector<2x32xi1>, vector<2x32xf32>
    %113 = arith.addf %112, %7 : vector<2x32xf32>
    %cst_50 = arith.constant 1.000000e+00 : f32
    %114 = vector.broadcast %cst_50 : f32 to vector<2x32xf32>
    %115 = arith.cmpf oge, %113, %114 : vector<2x32xf32>
    %116 = arith.extui %115 : vector<2x32xi1> to vector<2x32xi32>
    %117 = arith.sitofp %116 : vector<2x32xi32> to vector<2x32xf32>
    %c26 = arith.constant 26 : index
    %c0_51 = arith.constant 0 : index
    %118 = vector.load %arg8[%c26, %c0_51] : memref<32x32xf32, #tpu.memory_space<vmem>>, vector<2x32xf32>
    tpu.vector_store %arg8[%c26, %c0_51], %117 {strides = array<i32>} : memref<32x32xf32, #tpu.memory_space<vmem>>, vector<2x32xf32>,
    %cst_52 = arith.constant 0.000000e+00 : f32
    %119 = vector.broadcast %cst_52 : f32 to vector<2x32xf32>
    %120 = arith.select %115, %119, %113 : vector<2x32xi1>, vector<2x32xf32>
    %121 = arith.addf %120, %7 : vector<2x32xf32>
    %cst_53 = arith.constant 1.000000e+00 : f32
    %122 = vector.broadcast %cst_53 : f32 to vector<2x32xf32>
    %123 = arith.cmpf oge, %121, %122 : vector<2x32xf32>
    %124 = arith.extui %123 : vector<2x32xi1> to vector<2x32xi32>
    %125 = arith.sitofp %124 : vector<2x32xi32> to vector<2x32xf32>
    %c28 = arith.constant 28 : index
    %c0_54 = arith.constant 0 : index
    %126 = vector.load %arg8[%c28, %c0_54] : memref<32x32xf32, #tpu.memory_space<vmem>>, vector<2x32xf32>
    tpu.vector_store %arg8[%c28, %c0_54], %125 {strides = array<i32>} : memref<32x32xf32, #tpu.memory_space<vmem>>, vector<2x32xf32>,
    %cst_55 = arith.constant 0.000000e+00 : f32
    %127 = vector.broadcast %cst_55 : f32 to vector<2x32xf32>
    %128 = arith.select %123, %127, %121 : vector<2x32xi1>, vector<2x32xf32>
    %129 = arith.addf %128, %7 : vector<2x32xf32>
    %cst_56 = arith.constant 1.000000e+00 : f32
    %130 = vector.broadcast %cst_56 : f32 to vector<2x32xf32>
    %131 = arith.cmpf oge, %129, %130 : vector<2x32xf32>
    %132 = arith.extui %131 : vector<2x32xi1> to vector<2x32xi32>
    %133 = arith.sitofp %132 : vector<2x32xi32> to vector<2x32xf32>
    %c30 = arith.constant 30 : index
    %c0_57 = arith.constant 0 : index
    %134 = vector.load %arg8[%c30, %c0_57] : memref<32x32xf32, #tpu.memory_space<vmem>>, vector<2x32xf32>
    tpu.vector_store %arg8[%c30, %c0_57], %133 {strides = array<i32>} : memref<32x32xf32, #tpu.memory_space<vmem>>, vector<2x32xf32>,
    %c0_58 = arith.constant 0 : index
    %c0_59 = arith.constant 0 : index
    %135 = vector.load %arg8[%c0_58, %c0_59] : memref<32x32xf32, #tpu.memory_space<vmem>>, vector<32x32xf32>
    %136 = arith.truncf %135 : vector<32x32xf32> to vector<32x32xbf16>
    %cst_60 = arith.constant dense<0.000000e+00> : vector<32x32xf32>
    %137 = tpu.matmul %136, %2, %cst_60 {dimension_numbers = #tpu.dot_dimension_numbers<[1], [0], [0], [1], [0, 0, 1, 1], [], []>} : vector<32x32xbf16>, vector<32x32xbf16>, vector<32x32xf32> -> vector<32x32xf32>
    %c0_61 = arith.constant 0 : index
    %c0_62 = arith.constant 0 : index
    %138 = vector.load %arg4[%c0_61, %c0_62] : memref<1x32xf32, #tpu.memory_space<vmem>>, vector<1x32xf32>
    %139 = vector.broadcast %138 : vector<1x32xf32> to vector<32x32xf32>
    %140 = arith.addf %137, %139 : vector<32x32xf32>
    %c0_63 = arith.constant 0 : index
    %c0_64 = arith.constant 0 : index
    %141 = vector.load %arg9[%c0_63, %c0_64] : memref<32x32xf32, #tpu.memory_space<vmem>>, vector<32x32xf32>
    tpu.vector_store %arg9[%c0_63, %c0_64], %140 {strides = array<i32>} : memref<32x32xf32, #tpu.memory_space<vmem>>, vector<32x32xf32>,
    %cst_65 = arith.constant 0.000000e+00 : f32
    %142 = vector.broadcast %cst_65 : f32 to vector<2x32xf32>
    %c0_66 = arith.constant 0 : index
    %c0_67 = arith.constant 0 : index
    %143 = vector.load %arg9[%c0_66, %c0_67] : memref<32x32xf32, #tpu.memory_space<vmem>>, vector<2x32xf32>
    %144 = arith.addf %142, %143 : vector<2x32xf32>
    %cst_68 = arith.constant 1.000000e+00 : f32
    %145 = vector.broadcast %cst_68 : f32 to vector<2x32xf32>
    %146 = arith.cmpf oge, %144, %145 : vector<2x32xf32>
    %147 = arith.extui %146 : vector<2x32xi1> to vector<2x32xi32>
    %148 = arith.sitofp %147 : vector<2x32xi32> to vector<2x32xf32>
    %c0_69 = arith.constant 0 : index
    %c0_70 = arith.constant 0 : index
    %149 = vector.load %arg10[%c0_69, %c0_70] : memref<32x32xf32, #tpu.memory_space<vmem>>, vector<2x32xf32>
    tpu.vector_store %arg10[%c0_69, %c0_70], %148 {strides = array<i32>} : memref<32x32xf32, #tpu.memory_space<vmem>>, vector<2x32xf32>,
    %cst_71 = arith.constant 0.000000e+00 : f32
    %150 = vector.broadcast %cst_71 : f32 to vector<2x32xf32>
    %151 = arith.select %146, %150, %144 : vector<2x32xi1>, vector<2x32xf32>
    %c2_72 = arith.constant 2 : index
    %c0_73 = arith.constant 0 : index
    %152 = vector.load %arg9[%c2_72, %c0_73] : memref<32x32xf32, #tpu.memory_space<vmem>>, vector<2x32xf32>
    %153 = arith.addf %151, %152 : vector<2x32xf32>
    %cst_74 = arith.constant 1.000000e+00 : f32
    %154 = vector.broadcast %cst_74 : f32 to vector<2x32xf32>
    %155 = arith.cmpf oge, %153, %154 : vector<2x32xf32>
    %156 = arith.extui %155 : vector<2x32xi1> to vector<2x32xi32>
    %157 = arith.sitofp %156 : vector<2x32xi32> to vector<2x32xf32>
    %c2_75 = arith.constant 2 : index
    %c0_76 = arith.constant 0 : index
    %158 = vector.load %arg10[%c2_75, %c0_76] : memref<32x32xf32, #tpu.memory_space<vmem>>, vector<2x32xf32>
    tpu.vector_store %arg10[%c2_75, %c0_76], %157 {strides = array<i32>} : memref<32x32xf32, #tpu.memory_space<vmem>>, vector<2x32xf32>,
    %cst_77 = arith.constant 0.000000e+00 : f32
    %159 = vector.broadcast %cst_77 : f32 to vector<2x32xf32>
    %160 = arith.select %155, %159, %153 : vector<2x32xi1>, vector<2x32xf32>
    %c4_78 = arith.constant 4 : index
    %c0_79 = arith.constant 0 : index
    %161 = vector.load %arg9[%c4_78, %c0_79] : memref<32x32xf32, #tpu.memory_space<vmem>>, vector<2x32xf32>
    %162 = arith.addf %160, %161 : vector<2x32xf32>
    %cst_80 = arith.constant 1.000000e+00 : f32
    %163 = vector.broadcast %cst_80 : f32 to vector<2x32xf32>
    %164 = arith.cmpf oge, %162, %163 : vector<2x32xf32>
    %165 = arith.extui %164 : vector<2x32xi1> to vector<2x32xi32>
    %166 = arith.sitofp %165 : vector<2x32xi32> to vector<2x32xf32>
    %c4_81 = arith.constant 4 : index
    %c0_82 = arith.constant 0 : index
    %167 = vector.load %arg10[%c4_81, %c0_82] : memref<32x32xf32, #tpu.memory_space<vmem>>, vector<2x32xf32>
    tpu.vector_store %arg10[%c4_81, %c0_82], %166 {strides = array<i32>} : memref<32x32xf32, #tpu.memory_space<vmem>>, vector<2x32xf32>,
    %cst_83 = arith.constant 0.000000e+00 : f32
    %168 = vector.broadcast %cst_83 : f32 to vector<2x32xf32>
    %169 = arith.select %164, %168, %162 : vector<2x32xi1>, vector<2x32xf32>
    %c6_84 = arith.constant 6 : index
    %c0_85 = arith.constant 0 : index
    %170 = vector.load %arg9[%c6_84, %c0_85] : memref<32x32xf32, #tpu.memory_space<vmem>>, vector<2x32xf32>
    %171 = arith.addf %169, %170 : vector<2x32xf32>
    %cst_86 = arith.constant 1.000000e+00 : f32
    %172 = vector.broadcast %cst_86 : f32 to vector<2x32xf32>
    %173 = arith.cmpf oge, %171, %172 : vector<2x32xf32>
    %174 = arith.extui %173 : vector<2x32xi1> to vector<2x32xi32>
    %175 = arith.sitofp %174 : vector<2x32xi32> to vector<2x32xf32>
    %c6_87 = arith.constant 6 : index
    %c0_88 = arith.constant 0 : index
    %176 = vector.load %arg10[%c6_87, %c0_88] : memref<32x32xf32, #tpu.memory_space<vmem>>, vector<2x32xf32>
    tpu.vector_store %arg10[%c6_87, %c0_88], %175 {strides = array<i32>} : memref<32x32xf32, #tpu.memory_space<vmem>>, vector<2x32xf32>,
    %cst_89 = arith.constant 0.000000e+00 : f32
    %177 = vector.broadcast %cst_89 : f32 to vector<2x32xf32>
    %178 = arith.select %173, %177, %171 : vector<2x32xi1>, vector<2x32xf32>
    %c8_90 = arith.constant 8 : index
    %c0_91 = arith.constant 0 : index
    %179 = vector.load %arg9[%c8_90, %c0_91] : memref<32x32xf32, #tpu.memory_space<vmem>>, vector<2x32xf32>
    %180 = arith.addf %178, %179 : vector<2x32xf32>
    %cst_92 = arith.constant 1.000000e+00 : f32
    %181 = vector.broadcast %cst_92 : f32 to vector<2x32xf32>
    %182 = arith.cmpf oge, %180, %181 : vector<2x32xf32>
    %183 = arith.extui %182 : vector<2x32xi1> to vector<2x32xi32>
    %184 = arith.sitofp %183 : vector<2x32xi32> to vector<2x32xf32>
    %c8_93 = arith.constant 8 : index
    %c0_94 = arith.constant 0 : index
    %185 = vector.load %arg10[%c8_93, %c0_94] : memref<32x32xf32, #tpu.memory_space<vmem>>, vector<2x32xf32>
    tpu.vector_store %arg10[%c8_93, %c0_94], %184 {strides = array<i32>} : memref<32x32xf32, #tpu.memory_space<vmem>>, vector<2x32xf32>,
    %cst_95 = arith.constant 0.000000e+00 : f32
    %186 = vector.broadcast %cst_95 : f32 to vector<2x32xf32>
    %187 = arith.select %182, %186, %180 : vector<2x32xi1>, vector<2x32xf32>
    %c10_96 = arith.constant 10 : index
    %c0_97 = arith.constant 0 : index
    %188 = vector.load %arg9[%c10_96, %c0_97] : memref<32x32xf32, #tpu.memory_space<vmem>>, vector<2x32xf32>
    %189 = arith.addf %187, %188 : vector<2x32xf32>
    %cst_98 = arith.constant 1.000000e+00 : f32
    %190 = vector.broadcast %cst_98 : f32 to vector<2x32xf32>
    %191 = arith.cmpf oge, %189, %190 : vector<2x32xf32>
    %192 = arith.extui %191 : vector<2x32xi1> to vector<2x32xi32>
    %193 = arith.sitofp %192 : vector<2x32xi32> to vector<2x32xf32>
    %c10_99 = arith.constant 10 : index
    %c0_100 = arith.constant 0 : index
    %194 = vector.load %arg10[%c10_99, %c0_100] : memref<32x32xf32, #tpu.memory_space<vmem>>, vector<2x32xf32>
    tpu.vector_store %arg10[%c10_99, %c0_100], %193 {strides = array<i32>} : memref<32x32xf32, #tpu.memory_space<vmem>>, vector<2x32xf32>,
    %cst_101 = arith.constant 0.000000e+00 : f32
    %195 = vector.broadcast %cst_101 : f32 to vector<2x32xf32>
    %196 = arith.select %191, %195, %189 : vector<2x32xi1>, vector<2x32xf32>
    %c12_102 = arith.constant 12 : index
    %c0_103 = arith.constant 0 : index
    %197 = vector.load %arg9[%c12_102, %c0_103] : memref<32x32xf32, #tpu.memory_space<vmem>>, vector<2x32xf32>
    %198 = arith.addf %196, %197 : vector<2x32xf32>
    %cst_104 = arith.constant 1.000000e+00 : f32
    %199 = vector.broadcast %cst_104 : f32 to vector<2x32xf32>
    %200 = arith.cmpf oge, %198, %199 : vector<2x32xf32>
    %201 = arith.extui %200 : vector<2x32xi1> to vector<2x32xi32>
    %202 = arith.sitofp %201 : vector<2x32xi32> to vector<2x32xf32>
    %c12_105 = arith.constant 12 : index
    %c0_106 = arith.constant 0 : index
    %203 = vector.load %arg10[%c12_105, %c0_106] : memref<32x32xf32, #tpu.memory_space<vmem>>, vector<2x32xf32>
    tpu.vector_store %arg10[%c12_105, %c0_106], %202 {strides = array<i32>} : memref<32x32xf32, #tpu.memory_space<vmem>>, vector<2x32xf32>,
    %cst_107 = arith.constant 0.000000e+00 : f32
    %204 = vector.broadcast %cst_107 : f32 to vector<2x32xf32>
    %205 = arith.select %200, %204, %198 : vector<2x32xi1>, vector<2x32xf32>
    %c14_108 = arith.constant 14 : index
    %c0_109 = arith.constant 0 : index
    %206 = vector.load %arg9[%c14_108, %c0_109] : memref<32x32xf32, #tpu.memory_space<vmem>>, vector<2x32xf32>
    %207 = arith.addf %205, %206 : vector<2x32xf32>
    %cst_110 = arith.constant 1.000000e+00 : f32
    %208 = vector.broadcast %cst_110 : f32 to vector<2x32xf32>
    %209 = arith.cmpf oge, %207, %208 : vector<2x32xf32>
    %210 = arith.extui %209 : vector<2x32xi1> to vector<2x32xi32>
    %211 = arith.sitofp %210 : vector<2x32xi32> to vector<2x32xf32>
    %c14_111 = arith.constant 14 : index
    %c0_112 = arith.constant 0 : index
    %212 = vector.load %arg10[%c14_111, %c0_112] : memref<32x32xf32, #tpu.memory_space<vmem>>, vector<2x32xf32>
    tpu.vector_store %arg10[%c14_111, %c0_112], %211 {strides = array<i32>} : memref<32x32xf32, #tpu.memory_space<vmem>>, vector<2x32xf32>,
    %cst_113 = arith.constant 0.000000e+00 : f32
    %213 = vector.broadcast %cst_113 : f32 to vector<2x32xf32>
    %214 = arith.select %209, %213, %207 : vector<2x32xi1>, vector<2x32xf32>
    %c16_114 = arith.constant 16 : index
    %c0_115 = arith.constant 0 : index
    %215 = vector.load %arg9[%c16_114, %c0_115] : memref<32x32xf32, #tpu.memory_space<vmem>>, vector<2x32xf32>
    %216 = arith.addf %214, %215 : vector<2x32xf32>
    %cst_116 = arith.constant 1.000000e+00 : f32
    %217 = vector.broadcast %cst_116 : f32 to vector<2x32xf32>
    %218 = arith.cmpf oge, %216, %217 : vector<2x32xf32>
    %219 = arith.extui %218 : vector<2x32xi1> to vector<2x32xi32>
    %220 = arith.sitofp %219 : vector<2x32xi32> to vector<2x32xf32>
    %c16_117 = arith.constant 16 : index
    %c0_118 = arith.constant 0 : index
    %221 = vector.load %arg10[%c16_117, %c0_118] : memref<32x32xf32, #tpu.memory_space<vmem>>, vector<2x32xf32>
    tpu.vector_store %arg10[%c16_117, %c0_118], %220 {strides = array<i32>} : memref<32x32xf32, #tpu.memory_space<vmem>>, vector<2x32xf32>,
    %cst_119 = arith.constant 0.000000e+00 : f32
    %222 = vector.broadcast %cst_119 : f32 to vector<2x32xf32>
    %223 = arith.select %218, %222, %216 : vector<2x32xi1>, vector<2x32xf32>
    %c18_120 = arith.constant 18 : index
    %c0_121 = arith.constant 0 : index
    %224 = vector.load %arg9[%c18_120, %c0_121] : memref<32x32xf32, #tpu.memory_space<vmem>>, vector<2x32xf32>
    %225 = arith.addf %223, %224 : vector<2x32xf32>
    %cst_122 = arith.constant 1.000000e+00 : f32
    %226 = vector.broadcast %cst_122 : f32 to vector<2x32xf32>
    %227 = arith.cmpf oge, %225, %226 : vector<2x32xf32>
    %228 = arith.extui %227 : vector<2x32xi1> to vector<2x32xi32>
    %229 = arith.sitofp %228 : vector<2x32xi32> to vector<2x32xf32>
    %c18_123 = arith.constant 18 : index
    %c0_124 = arith.constant 0 : index
    %230 = vector.load %arg10[%c18_123, %c0_124] : memref<32x32xf32, #tpu.memory_space<vmem>>, vector<2x32xf32>
    tpu.vector_store %arg10[%c18_123, %c0_124], %229 {strides = array<i32>} : memref<32x32xf32, #tpu.memory_space<vmem>>, vector<2x32xf32>,
    %cst_125 = arith.constant 0.000000e+00 : f32
    %231 = vector.broadcast %cst_125 : f32 to vector<2x32xf32>
    %232 = arith.select %227, %231, %225 : vector<2x32xi1>, vector<2x32xf32>
    %c20_126 = arith.constant 20 : index
    %c0_127 = arith.constant 0 : index
    %233 = vector.load %arg9[%c20_126, %c0_127] : memref<32x32xf32, #tpu.memory_space<vmem>>, vector<2x32xf32>
    %234 = arith.addf %232, %233 : vector<2x32xf32>
    %cst_128 = arith.constant 1.000000e+00 : f32
    %235 = vector.broadcast %cst_128 : f32 to vector<2x32xf32>
    %236 = arith.cmpf oge, %234, %235 : vector<2x32xf32>
    %237 = arith.extui %236 : vector<2x32xi1> to vector<2x32xi32>
    %238 = arith.sitofp %237 : vector<2x32xi32> to vector<2x32xf32>
    %c20_129 = arith.constant 20 : index
    %c0_130 = arith.constant 0 : index
    %239 = vector.load %arg10[%c20_129, %c0_130] : memref<32x32xf32, #tpu.memory_space<vmem>>, vector<2x32xf32>
    tpu.vector_store %arg10[%c20_129, %c0_130], %238 {strides = array<i32>} : memref<32x32xf32, #tpu.memory_space<vmem>>, vector<2x32xf32>,
    %cst_131 = arith.constant 0.000000e+00 : f32
    %240 = vector.broadcast %cst_131 : f32 to vector<2x32xf32>
    %241 = arith.select %236, %240, %234 : vector<2x32xi1>, vector<2x32xf32>
    %c22_132 = arith.constant 22 : index
    %c0_133 = arith.constant 0 : index
    %242 = vector.load %arg9[%c22_132, %c0_133] : memref<32x32xf32, #tpu.memory_space<vmem>>, vector<2x32xf32>
    %243 = arith.addf %241, %242 : vector<2x32xf32>
    %cst_134 = arith.constant 1.000000e+00 : f32
    %244 = vector.broadcast %cst_134 : f32 to vector<2x32xf32>
    %245 = arith.cmpf oge, %243, %244 : vector<2x32xf32>
    %246 = arith.extui %245 : vector<2x32xi1> to vector<2x32xi32>
    %247 = arith.sitofp %246 : vector<2x32xi32> to vector<2x32xf32>
    %c22_135 = arith.constant 22 : index
    %c0_136 = arith.constant 0 : index
    %248 = vector.load %arg10[%c22_135, %c0_136] : memref<32x32xf32, #tpu.memory_space<vmem>>, vector<2x32xf32>
    tpu.vector_store %arg10[%c22_135, %c0_136], %247 {strides = array<i32>} : memref<32x32xf32, #tpu.memory_space<vmem>>, vector<2x32xf32>,
    %cst_137 = arith.constant 0.000000e+00 : f32
    %249 = vector.broadcast %cst_137 : f32 to vector<2x32xf32>
    %250 = arith.select %245, %249, %243 : vector<2x32xi1>, vector<2x32xf32>
    %c24_138 = arith.constant 24 : index
    %c0_139 = arith.constant 0 : index
    %251 = vector.load %arg9[%c24_138, %c0_139] : memref<32x32xf32, #tpu.memory_space<vmem>>, vector<2x32xf32>
    %252 = arith.addf %250, %251 : vector<2x32xf32>
    %cst_140 = arith.constant 1.000000e+00 : f32
    %253 = vector.broadcast %cst_140 : f32 to vector<2x32xf32>
    %254 = arith.cmpf oge, %252, %253 : vector<2x32xf32>
    %255 = arith.extui %254 : vector<2x32xi1> to vector<2x32xi32>
    %256 = arith.sitofp %255 : vector<2x32xi32> to vector<2x32xf32>
    %c24_141 = arith.constant 24 : index
    %c0_142 = arith.constant 0 : index
    %257 = vector.load %arg10[%c24_141, %c0_142] : memref<32x32xf32, #tpu.memory_space<vmem>>, vector<2x32xf32>
    tpu.vector_store %arg10[%c24_141, %c0_142], %256 {strides = array<i32>} : memref<32x32xf32, #tpu.memory_space<vmem>>, vector<2x32xf32>,
    %cst_143 = arith.constant 0.000000e+00 : f32
    %258 = vector.broadcast %cst_143 : f32 to vector<2x32xf32>
    %259 = arith.select %254, %258, %252 : vector<2x32xi1>, vector<2x32xf32>
    %c26_144 = arith.constant 26 : index
    %c0_145 = arith.constant 0 : index
    %260 = vector.load %arg9[%c26_144, %c0_145] : memref<32x32xf32, #tpu.memory_space<vmem>>, vector<2x32xf32>
    %261 = arith.addf %259, %260 : vector<2x32xf32>
    %cst_146 = arith.constant 1.000000e+00 : f32
    %262 = vector.broadcast %cst_146 : f32 to vector<2x32xf32>
    %263 = arith.cmpf oge, %261, %262 : vector<2x32xf32>
    %264 = arith.extui %263 : vector<2x32xi1> to vector<2x32xi32>
    %265 = arith.sitofp %264 : vector<2x32xi32> to vector<2x32xf32>
    %c26_147 = arith.constant 26 : index
    %c0_148 = arith.constant 0 : index
    %266 = vector.load %arg10[%c26_147, %c0_148] : memref<32x32xf32, #tpu.memory_space<vmem>>, vector<2x32xf32>
    tpu.vector_store %arg10[%c26_147, %c0_148], %265 {strides = array<i32>} : memref<32x32xf32, #tpu.memory_space<vmem>>, vector<2x32xf32>,
    %cst_149 = arith.constant 0.000000e+00 : f32
    %267 = vector.broadcast %cst_149 : f32 to vector<2x32xf32>
    %268 = arith.select %263, %267, %261 : vector<2x32xi1>, vector<2x32xf32>
    %c28_150 = arith.constant 28 : index
    %c0_151 = arith.constant 0 : index
    %269 = vector.load %arg9[%c28_150, %c0_151] : memref<32x32xf32, #tpu.memory_space<vmem>>, vector<2x32xf32>
    %270 = arith.addf %268, %269 : vector<2x32xf32>
    %cst_152 = arith.constant 1.000000e+00 : f32
    %271 = vector.broadcast %cst_152 : f32 to vector<2x32xf32>
    %272 = arith.cmpf oge, %270, %271 : vector<2x32xf32>
    %273 = arith.extui %272 : vector<2x32xi1> to vector<2x32xi32>
    %274 = arith.sitofp %273 : vector<2x32xi32> to vector<2x32xf32>
    %c28_153 = arith.constant 28 : index
    %c0_154 = arith.constant 0 : index
    %275 = vector.load %arg10[%c28_153, %c0_154] : memref<32x32xf32, #tpu.memory_space<vmem>>, vector<2x32xf32>
    tpu.vector_store %arg10[%c28_153, %c0_154], %274 {strides = array<i32>} : memref<32x32xf32, #tpu.memory_space<vmem>>, vector<2x32xf32>,
    %cst_155 = arith.constant 0.000000e+00 : f32
    %276 = vector.broadcast %cst_155 : f32 to vector<2x32xf32>
    %277 = arith.select %272, %276, %270 : vector<2x32xi1>, vector<2x32xf32>
    %c30_156 = arith.constant 30 : index
    %c0_157 = arith.constant 0 : index
    %278 = vector.load %arg9[%c30_156, %c0_157] : memref<32x32xf32, #tpu.memory_space<vmem>>, vector<2x32xf32>
    %279 = arith.addf %277, %278 : vector<2x32xf32>
    %cst_158 = arith.constant 1.000000e+00 : f32
    %280 = vector.broadcast %cst_158 : f32 to vector<2x32xf32>
    %281 = arith.cmpf oge, %279, %280 : vector<2x32xf32>
    %282 = arith.extui %281 : vector<2x32xi1> to vector<2x32xi32>
    %283 = arith.sitofp %282 : vector<2x32xi32> to vector<2x32xf32>
    %c30_159 = arith.constant 30 : index
    %c0_160 = arith.constant 0 : index
    %284 = vector.load %arg10[%c30_159, %c0_160] : memref<32x32xf32, #tpu.memory_space<vmem>>, vector<2x32xf32>
    tpu.vector_store %arg10[%c30_159, %c0_160], %283 {strides = array<i32>} : memref<32x32xf32, #tpu.memory_space<vmem>>, vector<2x32xf32>,
    %c0_161 = arith.constant 0 : index
    %c0_162 = arith.constant 0 : index
    %285 = vector.load %arg10[%c0_161, %c0_162] : memref<32x32xf32, #tpu.memory_space<vmem>>, vector<32x32xf32>
    %286 = arith.truncf %285 : vector<32x32xf32> to vector<32x32xbf16>
    %cst_163 = arith.constant dense<0.000000e+00> : vector<32x4xf32>
    %287 = tpu.matmul %286, %3, %cst_163 {dimension_numbers = #tpu.dot_dimension_numbers<[1], [0], [0], [1], [0, 0, 1, 1], [], []>} : vector<32x32xbf16>, vector<32x4xbf16>, vector<32x4xf32> -> vector<32x4xf32>
    %c0_164 = arith.constant 0 : index
    %c0_165 = arith.constant 0 : index
    %288 = vector.load %arg6[%c0_164, %c0_165] : memref<1x4xf32, #tpu.memory_space<vmem>>, vector<1x4xf32>
    %289 = vector.broadcast %288 : vector<1x4xf32> to vector<32x4xf32>
    %290 = arith.addf %287, %289 : vector<32x4xf32>
    %c0_166 = arith.constant 0 : index
    %c0_167 = arith.constant 0 : index
    %291 = vector.load %arg11[%c0_166, %c0_167] : memref<32x4xf32, #tpu.memory_space<vmem>>, vector<32x4xf32>
    tpu.vector_store %arg11[%c0_166, %c0_167], %290 {strides = array<i32>} : memref<32x4xf32, #tpu.memory_space<vmem>>, vector<32x4xf32>,
    %cst_168 = arith.constant 0.000000e+00 : f32
    %292 = vector.broadcast %cst_168 : f32 to vector<2x4xf32>
    %cst_169 = arith.constant 5.000000e-01 : f32
    %293 = vector.broadcast %cst_169 : f32 to vector<2x4xf32>
    %294 = arith.mulf %292, %293 : vector<2x4xf32>
    %c0_170 = arith.constant 0 : index
    %c0_171 = arith.constant 0 : index
    %295 = vector.load %arg11[%c0_170, %c0_171] : memref<32x4xf32, #tpu.memory_space<vmem>>, vector<2x4xf32>
    %cst_172 = arith.constant 5.000000e-01 : f32
    %296 = vector.broadcast %cst_172 : f32 to vector<2x4xf32>
    %297 = arith.mulf %295, %296 : vector<2x4xf32>
    %298 = arith.addf %294, %297 : vector<2x4xf32>
    %cst_173 = arith.constant 5.000000e-01 : f32
    %299 = vector.broadcast %cst_173 : f32 to vector<2x4xf32>
    %300 = arith.mulf %298, %299 : vector<2x4xf32>
    %c2_174 = arith.constant 2 : index
    %c0_175 = arith.constant 0 : index
    %301 = vector.load %arg11[%c2_174, %c0_175] : memref<32x4xf32, #tpu.memory_space<vmem>>, vector<2x4xf32>
    %cst_176 = arith.constant 5.000000e-01 : f32
    %302 = vector.broadcast %cst_176 : f32 to vector<2x4xf32>
    %303 = arith.mulf %301, %302 : vector<2x4xf32>
    %304 = arith.addf %300, %303 : vector<2x4xf32>
    %cst_177 = arith.constant 5.000000e-01 : f32
    %305 = vector.broadcast %cst_177 : f32 to vector<2x4xf32>
    %306 = arith.mulf %304, %305 : vector<2x4xf32>
    %c4_178 = arith.constant 4 : index
    %c0_179 = arith.constant 0 : index
    %307 = vector.load %arg11[%c4_178, %c0_179] : memref<32x4xf32, #tpu.memory_space<vmem>>, vector<2x4xf32>
    %cst_180 = arith.constant 5.000000e-01 : f32
    %308 = vector.broadcast %cst_180 : f32 to vector<2x4xf32>
    %309 = arith.mulf %307, %308 : vector<2x4xf32>
    %310 = arith.addf %306, %309 : vector<2x4xf32>
    %cst_181 = arith.constant 5.000000e-01 : f32
    %311 = vector.broadcast %cst_181 : f32 to vector<2x4xf32>
    %312 = arith.mulf %310, %311 : vector<2x4xf32>
    %c6_182 = arith.constant 6 : index
    %c0_183 = arith.constant 0 : index
    %313 = vector.load %arg11[%c6_182, %c0_183] : memref<32x4xf32, #tpu.memory_space<vmem>>, vector<2x4xf32>
    %cst_184 = arith.constant 5.000000e-01 : f32
    %314 = vector.broadcast %cst_184 : f32 to vector<2x4xf32>
    %315 = arith.mulf %313, %314 : vector<2x4xf32>
    %316 = arith.addf %312, %315 : vector<2x4xf32>
    %cst_185 = arith.constant 5.000000e-01 : f32
    %317 = vector.broadcast %cst_185 : f32 to vector<2x4xf32>
    %318 = arith.mulf %316, %317 : vector<2x4xf32>
    %c8_186 = arith.constant 8 : index
    %c0_187 = arith.constant 0 : index
    %319 = vector.load %arg11[%c8_186, %c0_187] : memref<32x4xf32, #tpu.memory_space<vmem>>, vector<2x4xf32>
    %cst_188 = arith.constant 5.000000e-01 : f32
    %320 = vector.broadcast %cst_188 : f32 to vector<2x4xf32>
    %321 = arith.mulf %319, %320 : vector<2x4xf32>
    %322 = arith.addf %318, %321 : vector<2x4xf32>
    %cst_189 = arith.constant 5.000000e-01 : f32
    %323 = vector.broadcast %cst_189 : f32 to vector<2x4xf32>
    %324 = arith.mulf %322, %323 : vector<2x4xf32>
    %c10_190 = arith.constant 10 : index
    %c0_191 = arith.constant 0 : index
    %325 = vector.load %arg11[%c10_190, %c0_191] : memref<32x4xf32, #tpu.memory_space<vmem>>, vector<2x4xf32>
    %cst_192 = arith.constant 5.000000e-01 : f32
    %326 = vector.broadcast %cst_192 : f32 to vector<2x4xf32>
    %327 = arith.mulf %325, %326 : vector<2x4xf32>
    %328 = arith.addf %324, %327 : vector<2x4xf32>
    %cst_193 = arith.constant 5.000000e-01 : f32
    %329 = vector.broadcast %cst_193 : f32 to vector<2x4xf32>
    %330 = arith.mulf %328, %329 : vector<2x4xf32>
    %c12_194 = arith.constant 12 : index
    %c0_195 = arith.constant 0 : index
    %331 = vector.load %arg11[%c12_194, %c0_195] : memref<32x4xf32, #tpu.memory_space<vmem>>, vector<2x4xf32>
    %cst_196 = arith.constant 5.000000e-01 : f32
    %332 = vector.broadcast %cst_196 : f32 to vector<2x4xf32>
    %333 = arith.mulf %331, %332 : vector<2x4xf32>
    %334 = arith.addf %330, %333 : vector<2x4xf32>
    %cst_197 = arith.constant 5.000000e-01 : f32
    %335 = vector.broadcast %cst_197 : f32 to vector<2x4xf32>
    %336 = arith.mulf %334, %335 : vector<2x4xf32>
    %c14_198 = arith.constant 14 : index
    %c0_199 = arith.constant 0 : index
    %337 = vector.load %arg11[%c14_198, %c0_199] : memref<32x4xf32, #tpu.memory_space<vmem>>, vector<2x4xf32>
    %cst_200 = arith.constant 5.000000e-01 : f32
    %338 = vector.broadcast %cst_200 : f32 to vector<2x4xf32>
    %339 = arith.mulf %337, %338 : vector<2x4xf32>
    %340 = arith.addf %336, %339 : vector<2x4xf32>
    %cst_201 = arith.constant 5.000000e-01 : f32
    %341 = vector.broadcast %cst_201 : f32 to vector<2x4xf32>
    %342 = arith.mulf %340, %341 : vector<2x4xf32>
    %c16_202 = arith.constant 16 : index
    %c0_203 = arith.constant 0 : index
    %343 = vector.load %arg11[%c16_202, %c0_203] : memref<32x4xf32, #tpu.memory_space<vmem>>, vector<2x4xf32>
    %cst_204 = arith.constant 5.000000e-01 : f32
    %344 = vector.broadcast %cst_204 : f32 to vector<2x4xf32>
    %345 = arith.mulf %343, %344 : vector<2x4xf32>
    %346 = arith.addf %342, %345 : vector<2x4xf32>
    %cst_205 = arith.constant 5.000000e-01 : f32
    %347 = vector.broadcast %cst_205 : f32 to vector<2x4xf32>
    %348 = arith.mulf %346, %347 : vector<2x4xf32>
    %c18_206 = arith.constant 18 : index
    %c0_207 = arith.constant 0 : index
    %349 = vector.load %arg11[%c18_206, %c0_207] : memref<32x4xf32, #tpu.memory_space<vmem>>, vector<2x4xf32>
    %cst_208 = arith.constant 5.000000e-01 : f32
    %350 = vector.broadcast %cst_208 : f32 to vector<2x4xf32>
    %351 = arith.mulf %349, %350 : vector<2x4xf32>
    %352 = arith.addf %348, %351 : vector<2x4xf32>
    %cst_209 = arith.constant 5.000000e-01 : f32
    %353 = vector.broadcast %cst_209 : f32 to vector<2x4xf32>
    %354 = arith.mulf %352, %353 : vector<2x4xf32>
    %c20_210 = arith.constant 20 : index
    %c0_211 = arith.constant 0 : index
    %355 = vector.load %arg11[%c20_210, %c0_211] : memref<32x4xf32, #tpu.memory_space<vmem>>, vector<2x4xf32>
    %cst_212 = arith.constant 5.000000e-01 : f32
    %356 = vector.broadcast %cst_212 : f32 to vector<2x4xf32>
    %357 = arith.mulf %355, %356 : vector<2x4xf32>
    %358 = arith.addf %354, %357 : vector<2x4xf32>
    %cst_213 = arith.constant 5.000000e-01 : f32
    %359 = vector.broadcast %cst_213 : f32 to vector<2x4xf32>
    %360 = arith.mulf %358, %359 : vector<2x4xf32>
    %c22_214 = arith.constant 22 : index
    %c0_215 = arith.constant 0 : index
    %361 = vector.load %arg11[%c22_214, %c0_215] : memref<32x4xf32, #tpu.memory_space<vmem>>, vector<2x4xf32>
    %cst_216 = arith.constant 5.000000e-01 : f32
    %362 = vector.broadcast %cst_216 : f32 to vector<2x4xf32>
    %363 = arith.mulf %361, %362 : vector<2x4xf32>
    %364 = arith.addf %360, %363 : vector<2x4xf32>
    %cst_217 = arith.constant 5.000000e-01 : f32
    %365 = vector.broadcast %cst_217 : f32 to vector<2x4xf32>
    %366 = arith.mulf %364, %365 : vector<2x4xf32>
    %c24_218 = arith.constant 24 : index
    %c0_219 = arith.constant 0 : index
    %367 = vector.load %arg11[%c24_218, %c0_219] : memref<32x4xf32, #tpu.memory_space<vmem>>, vector<2x4xf32>
    %cst_220 = arith.constant 5.000000e-01 : f32
    %368 = vector.broadcast %cst_220 : f32 to vector<2x4xf32>
    %369 = arith.mulf %367, %368 : vector<2x4xf32>
    %370 = arith.addf %366, %369 : vector<2x4xf32>
    %cst_221 = arith.constant 5.000000e-01 : f32
    %371 = vector.broadcast %cst_221 : f32 to vector<2x4xf32>
    %372 = arith.mulf %370, %371 : vector<2x4xf32>
    %c26_222 = arith.constant 26 : index
    %c0_223 = arith.constant 0 : index
    %373 = vector.load %arg11[%c26_222, %c0_223] : memref<32x4xf32, #tpu.memory_space<vmem>>, vector<2x4xf32>
    %cst_224 = arith.constant 5.000000e-01 : f32
    %374 = vector.broadcast %cst_224 : f32 to vector<2x4xf32>
    %375 = arith.mulf %373, %374 : vector<2x4xf32>
    %376 = arith.addf %372, %375 : vector<2x4xf32>
    %cst_225 = arith.constant 5.000000e-01 : f32
    %377 = vector.broadcast %cst_225 : f32 to vector<2x4xf32>
    %378 = arith.mulf %376, %377 : vector<2x4xf32>
    %c28_226 = arith.constant 28 : index
    %c0_227 = arith.constant 0 : index
    %379 = vector.load %arg11[%c28_226, %c0_227] : memref<32x4xf32, #tpu.memory_space<vmem>>, vector<2x4xf32>
    %cst_228 = arith.constant 5.000000e-01 : f32
    %380 = vector.broadcast %cst_228 : f32 to vector<2x4xf32>
    %381 = arith.mulf %379, %380 : vector<2x4xf32>
    %382 = arith.addf %378, %381 : vector<2x4xf32>
    %cst_229 = arith.constant 5.000000e-01 : f32
    %383 = vector.broadcast %cst_229 : f32 to vector<2x4xf32>
    %384 = arith.mulf %382, %383 : vector<2x4xf32>
    %c30_230 = arith.constant 30 : index
    %c0_231 = arith.constant 0 : index
    %385 = vector.load %arg11[%c30_230, %c0_231] : memref<32x4xf32, #tpu.memory_space<vmem>>, vector<2x4xf32>
    %cst_232 = arith.constant 5.000000e-01 : f32
    %386 = vector.broadcast %cst_232 : f32 to vector<2x4xf32>
    %387 = arith.mulf %385, %386 : vector<2x4xf32>
    %388 = arith.addf %384, %387 : vector<2x4xf32>
    %c0_233 = arith.constant 0 : index
    %c0_234 = arith.constant 0 : index
    %389 = vector.load %arg7[%c0_233, %c0_234] : memref<2x4xf32, #tpu.memory_space<vmem>>, vector<2x4xf32>
    tpu.vector_store %arg7[%c0_233, %c0_234], %388 {strides = array<i32>} : memref<2x4xf32, #tpu.memory_space<vmem>>, vector<2x4xf32>,
    return
  }
}

</mosaic_0001>

<bundles_post_ra>
// kernel: _lambda_.1
= control target key start
LH: loop header
LB: loop body
LE: loop exit
PB: predicated region body
PF: predicated region fallthrough
CT: control target
= control target key end

     0   :  { %v689_v2 = vmov 0.0|0.0   ;;  %vm690_vm0 = vmmov 0   ;;  %v691_v4 = vmov 0.0   ;;  %vm46_vm1 = vcmask 130048   ;;  %s867_s0 = inlined_call_operand.vmem [shape: f32[2,16], index: 0, kind: input, shape index: {}]   ;;  %s868_s1 = inlined_call_operand.vmem [shape: f32[16,32], index: 1, kind: input, shape index: {}]   ;;  %s869_s2 = inlined_call_operand.vmem [shape: f32[1,32], index: 2, kind: input, shape index: {}]   ;;  %s870_s3 = inlined_call_operand.vmem [shape: bf16[32,32], index: 3, kind: input, shape index: {}]   ;;  %s871_s4 = inlined_call_operand.vmem [shape: f32[1,32], index: 4, kind: input, shape index: {}]   ;;  %s872_s5 = inlined_call_operand.vmem [shape: bf16[32,4], index: 5, kind: input, shape index: {}]   ;;  %s873_s6 = inlined_call_operand.vmem [shape: f32[1,4], index: 6, kind: input, shape index: {}]   ;;  %s874_s7 = inlined_call_operand.hbm [shape: f32[2,4], index: 7, kind: output, shape index: {}]  }
   0x1   :  { %v29_v0 = vld [vmem:[%s868_s1] sm:$0xff]  ;;  %v30_v1 = vld [vmem:[%s868_s1 + $0x8] sm:$0xff]  ;;  %654 = vmatprep.subr.bf16.mxu0 %v689_v2  ;;  %635 = vmatprep.mubr.msk.f32.mxu0 %vm690_vm0, %v691_v4 }
   0x2   :  { %v655_v3 = vpack.c.bf16 %v30_v1, %v29_v0  ;;  %v28_v5 = vld [vmem:[%s867_s0] sm:$0x3] }
   0x4   :  { %656 = vmatpush3.bf16.msra.mxu0 %v655_v3 }
   0x5   :  { %12 = vsyncpa [#allocation7], 0  ;;  %v661_v6 = vld [vmem:[%s870_s3] sm:$0xff]   ;;  %v662_v7 = vld [vmem:[%s870_s3 + $0x8] sm:$0xff]   ;;  %vm124_vm2 = vcmask 254976   ;;  %vm241_vm13 = vcmask 261120  }
   0x6   :  { %638 = vmatprep.subr.bf16.mxu1 %v661_v6  ;;  %v576_v8 = vld [vmem:[%s869_s2] ss:$0 sm:$0xff]  ;;  %v664_v1 = vld [vmem:[%s872_s5 + $0x8] sm:$0xff]  }
   0x7   :  { %636 = vmatmul.mubr.msk.f32.vlgmr.msra.gmra.mrb[0].mxu0 %vm46_vm1, %v28_v5  ;;  %639 = vmatpush3.bf16.msra.mxu1 %v661_v6  ;;  %v663_v0 = vld [vmem:[%s872_s5] sm:$0xff]  }
   0x8   :  { %640 = vmatprep.subr.bf16.mxu1 %v662_v7  ;;  %646 = vmatprep.subr.bf16.mxu0 %v663_v0  ;;  %v594_v2 = vld [vmem:[%s871_s4] ss:$0 sm:$0xff] }
   0x9   :  { %647 = vmatpush3.bf16.msra.mxu0 %v663_v0 }
   0xa   :  { %648 = vmatprep.subr.bf16.mxu0 %v664_v1 }
   0xb   :  { %641 = vmatpush3.bf16.msra.mxu1 %v662_v7 }
   0xd   :  { %649 = vmatpush3.bf16.msra.mxu0 %v664_v1 }
  0xda   :  { %v116_v9 = vpop.f32.mrb[0].mxu0 }
  0xdb   :  { %v752_v10 = vadd.f32 %v576_v8, %v116_v9  ;;  %v637_v11 = vpop.f32.mrb[1].mxu0 }
  0xdd   :  { %vm121_vm3 = vcmp.ge.f32.partialorder %v752_v10, 1.0 }
  0xde   :  { %v578_v12 = vsel %vm121_vm3, 1.0, %v691_v4  ;;  %v126_v13 = vsel %vm121_vm3, 0.0, %v752_v10 }
  0xdf   :  { %125 = vst.msk [vmem:[#allocation2] sm:$0x3] %vm124_vm2, %v578_v12  ;;  %v127_v14 = vadd.f32 %v126_v13, %v752_v10 }
  0xe1   :  { %vm128_vm4 = vcmp.ge.f32.partialorder %v127_v14, 1.0 }
  0xe2   :  { %v579_v15 = vsel %vm128_vm4, 1.0, %v691_v4  ;;  %v132_v16 = vsel %vm128_vm4, 0.0, %v127_v14 }
  0xe3   :  { %131 = vst.msk [vmem:[#allocation2 + $0x2] sm:$0x3] %vm124_vm2, %v579_v15  ;;  %v133_v17 = vadd.f32 %v132_v16, %v752_v10 }
  0xe5   :  { %vm134_vm5 = vcmp.ge.f32.partialorder %v133_v17, 1.0 }
  0xe6   :  { %v580_v18 = vsel %vm134_vm5, 1.0, %v691_v4  ;;  %v138_v19 = vsel %vm134_vm5, 0.0, %v133_v17 }
  0xe7   :  { %137 = vst.msk [vmem:[#allocation2 + $0x4] sm:$0x3] %vm124_vm2, %v580_v18  ;;  %v139_v20 = vadd.f32 %v138_v19, %v752_v10 }
  0xe9   :  { %vm140_vm6 = vcmp.ge.f32.partialorder %v139_v20, 1.0 }
  0xea   :  { %v581_v21 = vsel %vm140_vm6, 1.0, %v691_v4  ;;  %v144_v22 = vsel %vm140_vm6, 0.0, %v139_v20 }
  0xeb   :  { %143 = vst.msk [vmem:[#allocation2 + $0x6] sm:$0x3] %vm124_vm2, %v581_v21  ;;  %v145_v23 = vadd.f32 %v144_v22, %v752_v10 }
  0xed   :  { %vm146_vm7 = vcmp.ge.f32.partialorder %v145_v23, 1.0 }
  0xee   :  { %v582_v24 = vsel %vm146_vm7, 1.0, %v691_v4  ;;  %v150_v25 = vsel %vm146_vm7, 0.0, %v145_v23 }
  0xef   :  { %149 = vst.msk [vmem:[#allocation2 + $0x8] sm:$0x3] %vm124_vm2, %v582_v24  ;;  %v151_v26 = vadd.f32 %v150_v25, %v752_v10 }
  0xf1   :  { %vm152_vm8 = vcmp.ge.f32.partialorder %v151_v26, 1.0 }
  0xf2   :  { %v583_v27 = vsel %vm152_vm8, 1.0, %v691_v4  ;;  %v156_v28 = vsel %vm152_vm8, 0.0, %v151_v26  ;;  %v216_v39 = vld [vmem:[#allocation2] sm:$0xff] }
  0xf3   :  { %155 = vst.msk [vmem:[#allocation2 + $0xa] sm:$0x3] %vm124_vm2, %v583_v27  ;;  %v157_v29 = vadd.f32 %v156_v28, %v752_v10 }
  0xf5   :  { %vm158_vm9 = vcmp.ge.f32.partialorder %v157_v29, 1.0 }
  0xf6   :  { %v584_v30 = vsel %vm158_vm9, 1.0, %v691_v4  ;;  %v162_v31 = vsel %vm158_vm9, 0.0, %v157_v29 }
  0xf7   :  { %161 = vst.msk [vmem:[#allocation2 + $0xc] sm:$0x3] %vm124_vm2, %v584_v30  ;;  %v163_v32 = vadd.f32 %v162_v31, %v752_v10 }
  0xf9   :  { %vm164_vm10 = vcmp.ge.f32.partialorder %v163_v32, 1.0 }
  0xfa   :  { %v585_v33 = vsel %vm164_vm10, 1.0, %v691_v4  ;;  %v168_v34 = vsel %vm164_vm10, 0.0, %v163_v32 }
  0xfb   :  { %167 = vst.msk [vmem:[#allocation2 + $0xe] sm:$0x3] %vm124_vm2, %v585_v33  ;;  %v169_v35 = vadd.f32 %v168_v34, %v752_v10 }
  0xfd   :  { %vm170_vm11 = vcmp.ge.f32.partialorder %v169_v35, 1.0 }
  0xfe   :  { %v174_v36 = vsel %vm170_vm11, 0.0, %v169_v35  ;;  %v586_v37 = vsel %vm170_vm11, 1.0, %v691_v4 }
  0xff   :  { %v175_v38 = vadd.f32 %v174_v36, %v752_v10  ;;  %173 = vst.msk [vmem:[#allocation2 + $0x10] sm:$0x3] %vm124_vm2, %v586_v37 }
 0x101   :  { %vm176_vm12 = vcmp.ge.f32.partialorder %v175_v38, 1.0 }
 0x102   :  { %v217_v40 = vld [vmem:[#allocation2 + $0x8] sm:$0xff]  ;;  %v587_v41 = vsel %vm176_vm12, 1.0, %v691_v4  ;;  %v180_v42 = vsel %vm176_vm12, 0.0, %v175_v38 }
 0x103   :  { %v220_v43 = vpack.c.bf16 %v217_v40, %v216_v39  ;;  %179 = vst.msk [vmem:[#allocation2 + $0x12] sm:$0x3] %vm124_vm2, %v587_v41  ;;  %v181_v44 = vadd.f32 %v180_v42, %v752_v10 }
 0x105   :  { %642 = vmatprep.mubr.msk.bf16.mxu1 %vm241_vm13, %v220_v43  ;;  %vm182_vm14 = vcmp.ge.f32.partialorder %v181_v44, 1.0 }
 0x106   :  { %v588_v45 = vsel %vm182_vm14, 1.0, %v691_v4  ;;  %v186_v46 = vsel %vm182_vm14, 0.0, %v181_v44 }
 0x107   :  { %185 = vst.msk [vmem:[#allocation2 + $0x14] sm:$0x3] %vm124_vm2, %v588_v45  ;;  %v187_v47 = vadd.f32 %v186_v46, %v752_v10 }
 0x109   :  { %vm188_vm15 = vcmp.ge.f32.partialorder %v187_v47, 1.0 }
 0x10a   :  { %v589_v48 = vsel %vm188_vm15, 1.0, %v691_v4  ;;  %v192_v49 = vsel %vm188_vm15, 0.0, %v187_v47 }
 0x10b   :  { %191 = vst.msk [vmem:[#allocation2 + $0x16] sm:$0x3] %vm124_vm2, %v589_v48  ;;  %v193_v50 = vadd.f32 %v192_v49, %v752_v10 }
 0x10d   :  { %vm194_vm0 = vcmp.ge.f32.partialorder %v193_v50, 1.0 }
 0x10e   :  { %v590_v51 = vsel %vm194_vm0, 1.0, %v691_v4  ;;  %v198_v52 = vsel %vm194_vm0, 0.0, %v193_v50 }
 0x10f   :  { %197 = vst.msk [vmem:[#allocation2 + $0x18] sm:$0x3] %vm124_vm2, %v590_v51  ;;  %v199_v53 = vadd.f32 %v198_v52, %v752_v10 }
 0x111   :  { %vm200_vm1 = vcmp.ge.f32.partialorder %v199_v53, 1.0 }
 0x112   :  { %v591_v54 = vsel %vm200_vm1, 1.0, %v691_v4  ;;  %v204_v55 = vsel %vm200_vm1, 0.0, %v199_v53  ;;  %v218_v61 = vld [vmem:[#allocation2 + $0x10] sm:$0xff] }
 0x113   :  { %203 = vst.msk [vmem:[#allocation2 + $0x1a] sm:$0x3] %vm124_vm2, %v591_v54  ;;  %v205_v56 = vadd.f32 %v204_v55, %v752_v10 }
 0x115   :  { %vm206_vm3 = vcmp.ge.f32.partialorder %v205_v56, 1.0 }
 0x116   :  { %v592_v57 = vsel %vm206_vm3, 1.0, %v691_v4  ;;  %v210_v58 = vsel %vm206_vm3, 0.0, %v205_v56 }
 0x117   :  { %209 = vst.msk [vmem:[#allocation2 + $0x1c] sm:$0x3] %vm124_vm2, %v592_v57  ;;  %v211_v59 = vadd.f32 %v210_v58, %v752_v10 }
 0x119   :  { %vm212_vm4 = vcmp.ge.f32.partialorder %v211_v59, 1.0 }
 0x11a   :  { %v593_v60 = vsel %vm212_vm4, 1.0, %v691_v4 }
 0x11b   :  { %215 = vst.msk [vmem:[#allocation2 + $0x1e] sm:$0x3] %vm124_vm2, %v593_v60 }
 0x122   :  { %v219_v62 = vld [vmem:[#allocation2 + $0x18] sm:$0xff] }
 0x123   :  { %v221_v63 = vpack.c.bf16 %v219_v62, %v218_v61 }
 0x125   :  { %643 = vmatmul.mubr.msk.bf16.vlgmr.msra.gmra.mrb[0].mxu1 %vm241_vm13, %v221_v63 }
 0x1f8   :  { %v644_v3 = vpop.f32.mrb[0].mxu1 }
 0x1f9   :  { %v291_v5 = vadd.f32 %v644_v3, %v594_v2  ;;  %v282_v6 = vpop.f32.mrb[1].mxu1 }
 0x1fa   :  { %v283_v7 = vadd.f32 %v594_v2, %v282_v6  ;;  %v645_v8 = vpop.f32.mrb[2].mxu1 }
 0x1fb   :  { %299 = vst.msk [vmem:[#allocation3 + $0x10] sm:$0xff] %vm241_vm13, %v291_v5  ;;  %v294_v9 = vadd.f32 %v645_v8, %v594_v2  ;;  %v285_v10 = vpop.f32.mrb[3].mxu1 }
 0x1fc   :  { %297 = vst.msk [vmem:[#allocation3] sm:$0xff] %vm241_vm13, %v283_v7  ;;  %v286_v11 = vadd.f32 %v594_v2, %v285_v10 }
 0x1fd   :  { %300 = vst.msk [vmem:[#allocation3 + $0x18] sm:$0xff] %vm241_vm13, %v294_v9 }
 0x1fe   :  { %298 = vst.msk [vmem:[#allocation3 + $0x8] sm:$0xff] %vm241_vm13, %v286_v11 }
 0x202   :  { %v357_v41 = vld [vmem:[#allocation3 + $0x10] sm:$0x3]  ;;  %v364_v45 = vld [vmem:[#allocation3 + $0x12] sm:$0x3]  ;;  %v371_v49 = vld [vmem:[#allocation3 + $0x14] sm:$0x3] }
 0x203   :  { %v301_v12 = vld [vmem:[#allocation3] sm:$0x3]  ;;  %v308_v15 = vld [vmem:[#allocation3 + $0x2] sm:$0x3]  ;;  %v315_v19 = vld [vmem:[#allocation3 + $0x4] sm:$0x3] }
 0x204   :  { %vm303_vm5 = vcmp.ge.f32.partialorder %v301_v12, 1.0  ;;  %v322_v23 = vld [vmem:[#allocation3 + $0x6] sm:$0x3]  ;;  %v378_v56 = vld [vmem:[#allocation3 + $0x16] sm:$0x3] }
 0x205   :  { %v599_v13 = vsel %vm303_vm5, 1.0, %v691_v4  ;;  %v307_v14 = vsel %vm303_vm5, 0.0, %v301_v12  ;;  %v329_v27 = vld [vmem:[#allocation3 + $0x8] sm:$0x3]  ;;  %v336_v31 = vld [vmem:[#allocation3 + $0xa] sm:$0x3] }
 0x206   :  { %306 = vst.msk [vmem:[#allocation4] sm:$0x3] %vm124_vm2, %v599_v13  ;;  %v309_v16 = vadd.f32 %v308_v15, %v307_v14  ;;  %v343_v35 = vld [vmem:[#allocation3 + $0xc] sm:$0x3]  ;;  %v350_v39 = vld [vmem:[#allocation3 + $0xe] sm:$0x3] }
 0x207   :  { %v385_v60 = vld [vmem:[#allocation3 + $0x18] sm:$0x3]  ;;  %v392_v0 = vld [vmem:[#allocation3 + $0x1a] sm:$0x3]  ;;  %v399_v5 = vld [vmem:[#allocation3 + $0x1c] sm:$0x3] }
 0x208   :  { %vm310_vm6 = vcmp.ge.f32.partialorder %v309_v16, 1.0  ;;  %v406_v9 = vld [vmem:[#allocation3 + $0x1e] sm:$0x3] }
 0x209   :  { %v600_v17 = vsel %vm310_vm6, 1.0, %v691_v4  ;;  %v314_v18 = vsel %vm310_vm6, 0.0, %v309_v16 }
 0x20a   :  { %313 = vst.msk [vmem:[#allocation4 + $0x2] sm:$0x3] %vm124_vm2, %v600_v17  ;;  %v316_v20 = vadd.f32 %v315_v19, %v314_v18  ;;  %v615_v17 = vld [vmem:[%s873_s6] ss:$0 sm:$0xff]  ;;  %s692_s6 = smov [#allocation6]  }
 0x20b   :  { %s568_s15 = sshll.u32 %s692_s6, 4  ;;  %s569_s15 = int_to_ptr.vmem [resolvable:$true] %s568_s15 }
 0x20c   :  { %vm317_vm7 = vcmp.ge.f32.partialorder %v316_v20, 1.0  ;;  %s665_s16 = scalar_lea.vmem %s569_s15, 32  ;;  %p670_p1 = scmp.lt.s32.totalorder %s569_s15, %s569_s15 }
 0x20d   :  { %v601_v21 = vsel %vm317_vm7, 1.0, %v691_v4  ;;  %v321_v22 = vsel %vm317_vm7, 0.0, %v316_v20  ;;  %vm492_vm7 = vcmask 31744   ;;  %p666_p0 = scmp.ne.s32.totalorder %s569_s15, %s665_s16  ;;  %p671_p2 = scmp.lt.s32.totalorder %s665_s16, %s665_s16 }
 0x20e   :  { %320 = vst.msk [vmem:[#allocation4 + $0x4] sm:$0x3] %vm124_vm2, %v601_v21  ;;  %v323_v24 = vadd.f32 %v322_v23, %v321_v22 }
 0x20f   :  { %p672_p3 = por %p671_p2, %p670_p1 }
 0x210   :  { %vm324_vm8 = vcmp.ge.f32.partialorder %v323_v24, 1.0 }
 0x211   :  { %v602_v25 = vsel %vm324_vm8, 1.0, %v691_v4  ;;  %v328_v26 = vsel %vm324_vm8, 0.0, %v323_v24  ;;  %p673_p4 = pnand %p672_p3, %p666_p0 }
 0x212   :  { %327 = vst.msk [vmem:[#allocation4 + $0x6] sm:$0x3] %vm124_vm2, %v602_v25  ;;  %v330_v28 = vadd.f32 %v329_v27, %v328_v26 }
 0x214   :  { %vm331_vm9 = vcmp.ge.f32.partialorder %v330_v28, 1.0 }
 0x215   :  { %v603_v29 = vsel %vm331_vm9, 1.0, %v691_v4  ;;  %v335_v30 = vsel %vm331_vm9, 0.0, %v330_v28 }
 0x216   :  { %334 = vst.msk [vmem:[#allocation4 + $0x8] sm:$0x3] %vm124_vm2, %v603_v29  ;;  %v337_v32 = vadd.f32 %v336_v31, %v335_v30 }
 0x218   :  { %vm338_vm10 = vcmp.ge.f32.partialorder %v337_v32, 1.0 }
 0x219   :  { %v604_v33 = vsel %vm338_vm10, 1.0, %v691_v4  ;;  %v342_v34 = vsel %vm338_vm10, 0.0, %v337_v32  ;;  %v412_v52 = vld [vmem:[#allocation4] sm:$0xff] }
 0x21a   :  { %341 = vst.msk [vmem:[#allocation4 + $0xa] sm:$0x3] %vm124_vm2, %v604_v33  ;;  %v344_v36 = vadd.f32 %v343_v35, %v342_v34 }
 0x21c   :  { %vm345_vm11 = vcmp.ge.f32.partialorder %v344_v36, 1.0 }
 0x21d   :  { %v605_v37 = vsel %vm345_vm11, 1.0, %v691_v4  ;;  %v349_v38 = vsel %vm345_vm11, 0.0, %v344_v36 }
 0x21e   :  { %348 = vst.msk [vmem:[#allocation4 + $0xc] sm:$0x3] %vm124_vm2, %v605_v37  ;;  %v351_v40 = vadd.f32 %v350_v39, %v349_v38 }
 0x220   :  { %vm352_vm12 = vcmp.ge.f32.partialorder %v351_v40, 1.0 }
 0x221   :  { %v606_v42 = vsel %vm352_vm12, 1.0, %v691_v4  ;;  %v356_v43 = vsel %vm352_vm12, 0.0, %v351_v40 }
 0x222   :  { %355 = vst.msk [vmem:[#allocation4 + $0xe] sm:$0x3] %vm124_vm2, %v606_v42  ;;  %v358_v44 = vadd.f32 %v357_v41, %v356_v43 }
 0x224   :  { %vm359_vm14 = vcmp.ge.f32.partialorder %v358_v44, 1.0 }
 0x225   :  { %v607_v46 = vsel %vm359_vm14, 1.0, %v691_v4  ;;  %v363_v47 = vsel %vm359_vm14, 0.0, %v358_v44 }
 0x226   :  { %362 = vst.msk [vmem:[#allocation4 + $0x10] sm:$0x3] %vm124_vm2, %v607_v46  ;;  %v365_v48 = vadd.f32 %v364_v45, %v363_v47 }
 0x228   :  { %vm366_vm15 = vcmp.ge.f32.partialorder %v365_v48, 1.0 }
 0x229   :  { %v608_v50 = vsel %vm366_vm15, 1.0, %v691_v4  ;;  %v370_v51 = vsel %vm366_vm15, 0.0, %v365_v48  ;;  %v413_v53 = vld [vmem:[#allocation4 + $0x8] sm:$0xff] }
 0x22a   :  { %v372_v54 = vadd.f32 %v371_v49, %v370_v51  ;;  %369 = vst.msk [vmem:[#allocation4 + $0x12] sm:$0x3] %vm124_vm2, %v608_v50  ;;  %v416_v55 = vpack.c.bf16 %v413_v53, %v412_v52 }
 0x22c   :  { %vm373_vm0 = vcmp.ge.f32.partialorder %v372_v54, 1.0  ;;  %650 = vmatprep.mubr.msk.bf16.mxu0 %vm241_vm13, %v416_v55 }
 0x22d   :  { %v377_v57 = vsel %vm373_vm0, 0.0, %v372_v54  ;;  %v609_v58 = vsel %vm373_vm0, 1.0, %v691_v4 }
 0x22e   :  { %v379_v59 = vadd.f32 %v378_v56, %v377_v57  ;;  %376 = vst.msk [vmem:[#allocation4 + $0x14] sm:$0x3] %vm124_vm2, %v609_v58 }
 0x230   :  { %vm380_vm1 = vcmp.ge.f32.partialorder %v379_v59, 1.0 }
 0x231   :  { %v610_v61 = vsel %vm380_vm1, 1.0, %v691_v4  ;;  %v384_v62 = vsel %vm380_vm1, 0.0, %v379_v59 }
 0x232   :  { %383 = vst.msk [vmem:[#allocation4 + $0x16] sm:$0x3] %vm124_vm2, %v610_v61  ;;  %v386_v63 = vadd.f32 %v385_v60, %v384_v62 }
 0x234   :  { %vm387_vm3 = vcmp.ge.f32.partialorder %v386_v63, 1.0 }
 0x235   :  { %v611_v1 = vsel %vm387_vm3, 1.0, %v691_v4  ;;  %v391_v2 = vsel %vm387_vm3, 0.0, %v386_v63 }
 0x236   :  { %390 = vst.msk [vmem:[#allocation4 + $0x18] sm:$0x3] %vm124_vm2, %v611_v1  ;;  %v393_v3 = vadd.f32 %v392_v0, %v391_v2 }
 0x238   :  { %vm394_vm4 = vcmp.ge.f32.partialorder %v393_v3, 1.0 }
 0x239   :  { %v612_v6 = vsel %vm394_vm4, 1.0, %v691_v4  ;;  %v398_v7 = vsel %vm394_vm4, 0.0, %v393_v3  ;;  %v414_v14 = vld [vmem:[#allocation4 + $0x10] sm:$0xff] }
 0x23a   :  { %397 = vst.msk [vmem:[#allocation4 + $0x1a] sm:$0x3] %vm124_vm2, %v612_v6  ;;  %v400_v8 = vadd.f32 %v399_v5, %v398_v7 }
 0x23c   :  { %vm401_vm5 = vcmp.ge.f32.partialorder %v400_v8, 1.0 }
 0x23d   :  { %v613_v10 = vsel %vm401_vm5, 1.0, %v691_v4  ;;  %v405_v11 = vsel %vm401_vm5, 0.0, %v400_v8 }
 0x23e   :  { %404 = vst.msk [vmem:[#allocation4 + $0x1c] sm:$0x3] %vm124_vm2, %v613_v10  ;;  %v407_v12 = vadd.f32 %v406_v9, %v405_v11 }
 0x240   :  { %vm408_vm6 = vcmp.ge.f32.partialorder %v407_v12, 1.0 }
 0x241   :  { %v614_v13 = vsel %vm408_vm6, 1.0, %v691_v4 }
 0x242   :  { %411 = vst.msk [vmem:[#allocation4 + $0x1e] sm:$0x3] %vm124_vm2, %v614_v13  ;;  %vm560_vm2 = vcmask 25600  }
 0x249   :  { %v415_v15 = vld [vmem:[#allocation4 + $0x18] sm:$0xff] }
 0x24a   :  { %v417_v16 = vpack.c.bf16 %v415_v15, %v414_v14 }
 0x24c   :  { %651 = vmatmul.mubr.msk.bf16.vlgmr.msra.gmra.mrb[4].mxu0 %vm241_vm13, %v417_v16 }
 0x31f   :  { %v652_v18 = vpop.f32.mrb[4].mxu0 }
 0x320   :  { %v486_v19 = vadd.f32 %v652_v18, %v615_v17  ;;  %v477_v20 = vpop.f32.mrb[5].mxu0 }
 0x321   :  { %v478_v21 = vadd.f32 %v615_v17, %v477_v20  ;;  %v653_v22 = vpop.f32.mrb[6].mxu0 }
 0x322   :  { %495 = vst.msk [vmem:[#allocation5 + $0x10] sm:$0xff] %vm492_vm7, %v486_v19  ;;  %v489_v23 = vadd.f32 %v653_v22, %v615_v17  ;;  %v480_v4 = vpop.f32.mrb[7].mxu0 }
 0x323   :  { %493 = vst.msk [vmem:[#allocation5] sm:$0xff] %vm492_vm7, %v478_v21  ;;  %v481_v24 = vadd.f32 %v615_v17, %v480_v4 }
 0x324   :  { %496 = vst.msk [vmem:[#allocation5 + $0x18] sm:$0xff] %vm492_vm7, %v489_v23 }
 0x325   :  { %494 = vst.msk [vmem:[#allocation5 + $0x8] sm:$0xff] %vm492_vm7, %v481_v24 }
 0x329   :  { %v529_v54 = vld [vmem:[#allocation5 + $0x10] sm:$0x3]  ;;  %v533_v58 = vld [vmem:[#allocation5 + $0x12] sm:$0x3]  ;;  %v537_v62 = vld [vmem:[#allocation5 + $0x14] sm:$0x3] }
 0x32a   :  { %v497_v25 = vld [vmem:[#allocation5] sm:$0x3]  ;;  %v501_v26 = vld [vmem:[#allocation5 + $0x2] sm:$0x3]  ;;  %v505_v30 = vld [vmem:[#allocation5 + $0x4] sm:$0x3] }
 0x32b   :  { %v498_v27 = vmul.f32 0.5, %v497_v25  ;;  %v502_v29 = vmul.f32 0.5, %v501_v26  ;;  %v506_v33 = vmul.f32 0.5, %v505_v30  ;;  %v509_v34 = vld [vmem:[#allocation5 + $0x6] sm:$0x3]  ;;  %v530_v57 = vmul.f32 0.5, %v529_v54 }
 0x32c   :  { %v510_v36 = vmul.f32 0.5, %v509_v34  ;;  %v513_v38 = vld [vmem:[#allocation5 + $0x8] sm:$0x3]  ;;  %v517_v42 = vld [vmem:[#allocation5 + $0xa] sm:$0x3]  ;;  %v534_v61 = vmul.f32 0.5, %v533_v58 }
 0x32d   :  { %v500_v28 = vmul.f32 0.5, %v498_v27  ;;  %v514_v41 = vmul.f32 0.5, %v513_v38  ;;  %v518_v45 = vmul.f32 0.5, %v517_v42  ;;  %v521_v46 = vld [vmem:[#allocation5 + $0xc] sm:$0x3]  ;;  %v538_v1 = vmul.f32 0.5, %v537_v62 }
 0x32e   :  { %v522_v49 = vmul.f32 0.5, %v521_v46  ;;  %v525_v50 = vld [vmem:[#allocation5 + $0xe] sm:$0x3]  ;;  %v541_v2 = vld [vmem:[#allocation5 + $0x16] sm:$0x3] }
 0x32f   :  { %v503_v31 = vadd.f32 %v502_v29, %v500_v28  ;;  %v526_v53 = vmul.f32 0.5, %v525_v50  ;;  %v542_v6 = vmul.f32 0.5, %v541_v2  ;;  %v545_v7 = vld [vmem:[#allocation5 + $0x18] sm:$0x3]  ;;  %v549_v11 = vld [vmem:[#allocation5 + $0x1a] sm:$0x3] }
 0x330   :  { %v546_v10 = vmul.f32 0.5, %v545_v7  ;;  %v550_v14 = vmul.f32 0.5, %v549_v11  ;;  %v553_v15 = vld [vmem:[#allocation5 + $0x1c] sm:$0x3]  ;;  %v557_v19 = vld [vmem:[#allocation5 + $0x1e] sm:$0x3] }
 0x331   :  { %v504_v32 = vmul.f32 0.5, %v503_v31  ;;  %v554_v18 = vmul.f32 0.5, %v553_v15  ;;  %v558_v22 = vmul.f32 0.5, %v557_v19 }
 0x333   :  { %v507_v35 = vadd.f32 %v506_v33, %v504_v32 }
 0x335   :  { %v508_v37 = vmul.f32 0.5, %v507_v35 }
 0x337   :  { %v511_v39 = vadd.f32 %v510_v36, %v508_v37 }
 0x339   :  { %v512_v40 = vmul.f32 0.5, %v511_v39 }
 0x33b   :  { %v515_v43 = vadd.f32 %v514_v41, %v512_v40 }
 0x33d   :  { %v516_v44 = vmul.f32 0.5, %v515_v43 }
 0x33f   :  { %v519_v47 = vadd.f32 %v518_v45, %v516_v44 }
 0x341   :  { %v520_v48 = vmul.f32 0.5, %v519_v47 }
 0x343   :  { %v523_v51 = vadd.f32 %v522_v49, %v520_v48 }
 0x345   :  { %v524_v52 = vmul.f32 0.5, %v523_v51 }
 0x347   :  { %v527_v55 = vadd.f32 %v526_v53, %v524_v52 }
 0x349   :  { %v528_v56 = vmul.f32 0.5, %v527_v55 }
 0x34b   :  { %v531_v59 = vadd.f32 %v530_v57, %v528_v56 }
 0x34d   :  { %v532_v60 = vmul.f32 0.5, %v531_v59 }
 0x34f   :  { %v535_v63 = vadd.f32 %v534_v61, %v532_v60 }
 0x351   :  { %v536_v0 = vmul.f32 0.5, %v535_v63 }
 0x353   :  { %v539_v3 = vadd.f32 %v538_v1, %v536_v0 }
 0x355   :  { %v540_v5 = vmul.f32 0.5, %v539_v3 }
 0x357   :  { %v543_v8 = vadd.f32 %v542_v6, %v540_v5 }
 0x359   :  { %v544_v9 = vmul.f32 0.5, %v543_v8 }
 0x35b   :  { %v547_v12 = vadd.f32 %v546_v10, %v544_v9 }
 0x35d   :  { %v548_v13 = vmul.f32 0.5, %v547_v12 }
 0x35f   :  { %v551_v16 = vadd.f32 %v550_v14, %v548_v13 }
 0x361   :  { %v552_v17 = vmul.f32 0.5, %v551_v16 }
 0x363   :  { %v555_v20 = vadd.f32 %v554_v18, %v552_v17 }
 0x365   :  { %v556_v21 = vmul.f32 0.5, %v555_v20 }
 0x367   :  { %v559_v23 = vadd.f32 %v558_v22, %v556_v21 }
 0x369   :  { %561 = vst.msk [vmem:[#allocation6] sm:$0x3] %vm560_vm2, %v559_v23 }
 0x36a   :  { %676 = shalt.err (!%p673_p4)
}
 0x36b   :  { %s677_s19 = scalar_lea.hbm %s874_s7, 32 }
 0x36c   :  { %p678_p5 = scmp.ne.s32.totalorder %s874_s7, %s677_s19  ;;  %p681_p6 = scmp.lt.u32.totalorder %s677_s19, %s874_s7 }
 0x36e   :  { %p683_p7 = pnand %p681_p6, %p678_p5 }
 0x370   :  { %686 = shalt.err (!%p683_p7)
}
 0x371   :  { %571 = dma.vmem_to_hbm [thread:$0]  %s569_s15, 32, %s874_s7, [#allocation7]  }
 0x372   :  { %687 = dma.done.wait [#allocation7], 32  }
 0x373   :  { %688 = vsyncadd [#allocation7], 4294967264 }
 0x374   :  { %575 = vsyncpa [#allocation7], 1 }

</bundles_post_ra>
